<compile_context>
chip_gen: v5e
topology: v5e:2x2
jax: 0.10.0
libtpu: 0.0.40
codegen_flags: <defaults>
</compile_context>

<pallas_src>
import math
from functools import partial

import numpy as np
import jax
import jax.numpy as jnp
from jax.experimental import pallas as pl
from jax.experimental.pallas import tpu as pltpu


# ----------------------------------------------------------------------------
# Host-side constants
# ----------------------------------------------------------------------------
def _interp_matrix_f64(in_size: int, out_size: int) -> np.ndarray:
    """1-D bilinear interpolation matrix, torch align_corners=False semantics."""
    scale = in_size / out_size
    dst = np.arange(out_size, dtype=np.float64)
    src = (dst + 0.5) * scale - 0.5
    src = np.maximum(src, 0.0)                       # torch clamps negative coords
    i0 = np.minimum(np.floor(src).astype(np.int64), in_size - 1)
    i1 = np.minimum(i0 + 1, in_size - 1)
    l1 = src - i0
    l0 = 1.0 - l1
    m = np.zeros((out_size, in_size), dtype=np.float64)
    rows = np.arange(out_size)
    m[rows, i0] += l0
    m[rows, i1] += l1
    return m                                         # (out_size, in_size), f64


def _composed_interp(size: int, multiplier: float, n_stages: int):
    """Compose n_stages of 1-D bilinear resize into one matrix (float64)."""
    m = np.eye(size, dtype=np.float64)
    cur = size
    for _ in range(n_stages):
        nxt = int(math.floor(cur * multiplier))
        m = _interp_matrix_f64(cur, nxt) @ m
        cur = nxt
    return m, cur                                    # (cur, size), cur


def _choose_lane_tile(n: int) -> int:
    """Lane-aligned strip size for a large last dim (else the full dim)."""
    if n < 256 or n % 128 != 0:
        return n
    for tile in (512, 256, 128):
        if n % tile == 0 and n // tile >= 2:
            return tile
    return n


def _vmem_limit_bytes() -> int:
    cap = None
    try:
        cap = getattr(pltpu.get_tpu_info(), "vmem_capacity_bytes", None)
    except Exception:
        cap = None
    if not cap:
        cap = 64 * 1024 * 1024                       # conservative (v7x per-TC)
    return int(min(cap * 3 // 4, 100 * 1024 * 1024))


_FOLD_BYTES_LIMIT = 16 * 1024 * 1024                 # max resident kron(w, A_h)


# ----------------------------------------------------------------------------
# Pallas kernels
# ----------------------------------------------------------------------------
def _resize_kernel(x_ref, awt_ref, bh_ref, *rest, C, H, Ho, fold, has_bias):
    # x_ref  : (1, C*H, W)        per-batch activation slab
    # awt_ref: (W, Wo_tile)       composed column-interp matrix (transposed)
    # bh_ref : fold  -> (Cout*Ho, C*H)  kron(w_map, A_h)   (conv folded in)
    #          !fold -> (Ho, H)         composed row-interp matrix
    # rest   : [bias_col (Cout*Ho, 1)]  o_ref (1, rows_out, Wo_tile)
    if has_bias:
        bcol_ref, o_ref = rest
    else:
        (o_ref,) = rest

    x = x_ref[0].astype(jnp.float32)                                   # (C*H, W)
    # W-pass: one MXU matmul over all channels/rows.
    y = jnp.dot(x, awt_ref[...], preferred_element_type=jnp.float32)   # (C*H, Wo_t)

    if fold:
        # H-pass + 1x1 conv fused into a single MXU matmul; result is already
        # the lane-dense (Cout*Ho, Wo_tile) output slab -> no relayouts.
        out = jnp.dot(bh_ref[...], y, preferred_element_type=jnp.float32)
        if has_bias:
            out = out + bcol_ref[...]                # (rows_out, 1) broadcast
        o_ref[0] = out.astype(o_ref.dtype)
    else:
        # No channel remap: per-channel H-pass, stored directly as 2-D
        # row-slices of the output slab (no reshape / concatenate).
        ah = bh_ref[...]
        for c in range(C):                           # C is small & static
            zc = jnp.dot(ah, y[c * H:(c + 1) * H, :],
                         preferred_element_type=jnp.float32)           # (Ho, Wo_t)
            o_ref[0, c * Ho:(c + 1) * Ho, :] = zc.astype(o_ref.dtype)


def _chanmap_kernel(x_ref, w_ref, *rest, has_bias):
    # 1x1 conv only (n_stages == 0 corner case, or huge-image fallback).
    if has_bias:
        b_ref, o_ref = rest
    else:
        (o_ref,) = rest
    y = jnp.dot(w_ref[...], x_ref[0].astype(jnp.float32),
                preferred_element_type=jnp.float32)                    # (Cout, HWt)
    if has_bias:
        y = y + b_ref[...]
    o_ref[0] = y.astype(o_ref.dtype)


# ----------------------------------------------------------------------------
# Wrappers
# ----------------------------------------------------------------------------
def _channel_map(x, w_map, b_map):
    N, C, H, W = x.shape
    Cout = int(w_map.shape[0])
    has_bias = b_map is not None
    HW = H * W
    hw_tile = _choose_lane_tile(HW)
    n_strips = HW // hw_tile

    x_in = x.reshape(N, C, HW)
    inputs = [x_in, jnp.asarray(w_map, jnp.float32)]
    in_specs = [pl.BlockSpec((1, C, hw_tile), lambda n, s: (n, 0, s)),
                pl.BlockSpec((Cout, C), lambda n, s: (0, 0))]
    if has_bias:
        inputs.append(jnp.asarray(b_map, jnp.float32).reshape(Cout, 1))
        in_specs.append(pl.BlockSpec((Cout, 1), lambda n, s: (0, 0)))

    out = pl.pallas_call(
        partial(_chanmap_kernel, has_bias=has_bias),
        out_shape=jax.ShapeDtypeStruct((N, Cout, HW), x.dtype),
        grid=(N, n_strips),
        in_specs=in_specs,
        out_specs=pl.BlockSpec((1, Cout, hw_tile), lambda n, s: (n, 0, s)),
        compiler_params=pltpu.CompilerParams(
            dimension_semantics=("parallel", "parallel"),
            vmem_limit_bytes=_vmem_limit_bytes(),
        ),
    )(*inputs)
    return out.reshape(N, Cout, H, W)


def _fused_resize(x, a_h, a_w, w_map=None, b_map=None):
    # a_h: (Ho, H) f64 composed row matrix; a_w: (Wo, W) f64 composed col matrix.
    N, C, H, W = x.shape
    Ho, Wo = a_h.shape[0], a_w.shape[0]

    fold = w_map is not None
    if fold:
        Cout = int(w_map.shape[0])
        if Cout * Ho * C * H * 4 > _FOLD_BYTES_LIMIT:
            # Fold matrix too large for VMEM residence: resize only, then a
            # separate tiled 1x1-conv kernel.
            y = _fused_resize(x, a_h, a_w, None, None)
            return _channel_map(y, w_map, b_map)

    a_h_f32 = jnp.asarray(a_h.astype(np.float32))                     # (Ho, H)
    awt = jnp.asarray(a_w.T.astype(np.float32))                       # (W, Wo)

    if fold:
        bh = jnp.kron(jnp.asarray(w_map, jnp.float32), a_h_f32)       # (Cout*Ho, C*H)
        rows_out = Cout * Ho
    else:
        Cout = C
        bh = a_h_f32                                                  # (Ho, H)
        rows_out = C * Ho

    has_bias = fold and (b_map is not None)

    x_in = x.reshape(N, C * H, W)
    wo_tile = _choose_lane_tile(Wo)
    n_strips = Wo // wo_tile

    inputs = [x_in, awt, bh]
    in_specs = [
        pl.BlockSpec((1, C * H, W), lambda n, s: (n, 0, 0)),
        pl.BlockSpec((W, wo_tile), lambda n, s: (0, s)),
        pl.BlockSpec(tuple(bh.shape), lambda n, s: (0, 0)),   # constant -> resident
    ]
    if has_bias:
        b_col = jnp.repeat(jnp.asarray(b_map, jnp.float32).reshape(Cout, 1),
                           Ho, axis=0)                                # (Cout*Ho, 1)
        inputs.append(b_col)
        in_specs.append(pl.BlockSpec((rows_out, 1), lambda n, s: (0, 0)))

    kernel = partial(_resize_kernel, C=C, H=H, Ho=Ho, fold=fold, has_bias=has_bias)
    out = pl.pallas_call(
        kernel,
        out_shape=jax.ShapeDtypeStruct((N, rows_out, Wo), x.dtype),
        grid=(N, n_strips),
        in_specs=in_specs,
        out_specs=pl.BlockSpec((1, rows_out, wo_tile), lambda n, s: (n, 0, s)),
        compiler_params=pltpu.CompilerParams(
            dimension_semantics=("parallel", "parallel"),
            vmem_limit_bytes=_vmem_limit_bytes(),
        ),
    )(*inputs)
    return out.reshape(N, Cout, Ho, Wo)


def spatial_rescaler_forward(x, *, n_stages=1, multiplier=0.5, method="bilinear",
                             w_map=None, b_map=None):
    assert n_stages >= 0
    if method != "bilinear":
        # TODO(synk): 'nearest' / 'bicubic' / 'trilinear' / 'area' modes not implemented.
        raise NotImplementedError(method)
    if n_stages == 0:
        return _channel_map(x, w_map, b_map) if w_map is not None else x
    _, _, H, W = x.shape
    a_h, _ = _composed_interp(H, multiplier, n_stages)
    a_w, _ = _composed_interp(W, multiplier, n_stages)
    # NOTE: when Cout < Cin the 1x1 map could be applied before the resize
    # (it commutes); not needed for the channel-increasing configs tested here.
    return _fused_resize(x, a_h, a_w, w_map, b_map)


# ----------------------------------------------------------------------------
# Pure-JAX reference (per-stage, same math, no Pallas)
# ----------------------------------------------------------------------------
def _reference(x, *, n_stages, multiplier, w_map, b_map):
    for _ in range(n_stages):
        N, C, H, W = x.shape
        Ho, Wo = int(math.floor(H * multiplier)), int(math.floor(W * multiplier))
        a_h = jnp.asarray(_interp_matrix_f64(H, Ho).astype(np.float32))
        a_w = jnp.asarray(_interp_matrix_f64(W, Wo).astype(np.float32))
        x = jnp.einsum('oh,nchw,kw->ncok', a_h, x, a_w)
    if w_map is not None:
        x = jnp.einsum('kc,nchw->nkhw', w_map, x)
        if b_map is not None:
            x = x + b_map.reshape(1, -1, 1, 1)
    return x


if __name__ == "__main__":
    key = jax.random.PRNGKey(0)
    k_x, k_w, k_b = jax.random.split(key, 3)

    # Module config: in_channels=4, out_channels=8, multiplier=0.5, bilinear.
    N, Cin, H, W = 2, 4, 16, 16
    Cout = 8
    multiplier = 0.5

    x = jax.random.normal(k_x, (N, Cin, H, W), dtype=jnp.float32)
    w_map = jax.random.normal(k_w, (Cout, Cin), dtype=jnp.float32) / math.sqrt(Cin)
    b_map = jax.random.normal(k_b, (Cout,), dtype=jnp.float32)

    # 1) n_stages=1, channel remap, no bias (module default bias=False).
    out1 = spatial_rescaler_forward(x, n_stages=1, multiplier=multiplier,
                                    w_map=w_map, b_map=None)
    out1 = jax.block_until_ready(out1)
    ref1 = _reference(x, n_stages=1, multiplier=multiplier, w_map=w_map, b_map=None)
    assert out1.shape == (N, Cout, H // 2, W // 2), out1.shape
    assert jnp.allclose(out1, ref1, atol=1e-4, rtol=1e-4)

    # 2) n_stages=2 with bias: exercises host-side stage composition + fused bias.
    out2 = spatial_rescaler_forward(x, n_stages=2, multiplier=multiplier,
                                    w_map=w_map, b_map=b_map)
    out2 = jax.block_until_ready(out2)
    ref2 = _reference(x, n_stages=2, multiplier=multiplier, w_map=w_map, b_map=b_map)
    assert out2.shape == (N, Cout, H // 4, W // 4), out2.shape
    assert jnp.allclose(out2, ref2, atol=1e-4, rtol=1e-4)

    # 3) Resize only (out_channels=None): exercises the no-remap kernel branch.
    out3 = spatial_rescaler_forward(x, n_stages=1, multiplier=multiplier)
    out3 = jax.block_until_ready(out3)
    ref3 = _reference(x, n_stages=1, multiplier=multiplier, w_map=None, b_map=None)
    assert out3.shape == (N, Cin, H // 2, W // 2), out3.shape
    assert jnp.allclose(out3, ref3, atol=1e-4, rtol=1e-4)

    # 4) n_stages=0 with remap: pure 1x1-conv kernel path.
    out4 = spatial_rescaler_forward(x, n_stages=0, multiplier=multiplier,
                                    w_map=w_map, b_map=b_map)
    out4 = jax.block_until_ready(out4)
    ref4 = _reference(x, n_stages=0, multiplier=multiplier, w_map=w_map, b_map=b_map)
    assert out4.shape == (N, Cout, H, W), out4.shape
    assert jnp.allclose(out4, ref4, atol=1e-4, rtol=1e-4)

    print("KERNEL_OK")
</pallas_src>

<mosaic_0001>
module attributes {stable_mosaic.version = 11 : i64} {
  func.func @_resize_kernel(%arg0: i32, %arg1: i32, %arg2: memref<1x64x16xf32, #tpu.memory_space<vmem>>, %arg3: memref<16x8xf32, #tpu.memory_space<vmem>>, %arg4: memref<64x64xf32, #tpu.memory_space<vmem>>, %arg5: memref<1x64x8xf32, #tpu.memory_space<vmem>>) attributes {dimension_semantics = [#tpu.dimension_semantics<parallel>, #tpu.dimension_semantics<parallel>], iteration_bounds = array<i64: 2, 1>, scalar_prefetch = 0 : i64, scratch_operands = 0 : i64, tpu.core_type = #tpu.core_type<tc>, window_params = [{transform_indices = @transform_0, window_bounds = array<i64: 1, 64, 16>}, {transform_indices = @transform_1, window_bounds = array<i64: 16, 8>}, {pipeline_mode = #tpu.pipeline_mode<synchronous>, transform_indices = @transform_2, window_bounds = array<i64: 64, 64>}, {transform_indices = @transform_3, window_bounds = array<i64: 1, 64, 8>}]} {
    %c0 = arith.constant 0 : index
    %c0_0 = arith.constant 0 : index
    %c0_1 = arith.constant 0 : index
    %0 = vector.load %arg2[%c0, %c0_0, %c0_1] : memref<1x64x16xf32, #tpu.memory_space<vmem>>, vector<1x64x16xf32>
    %1 = vector.shape_cast %0 : vector<1x64x16xf32> to vector<64x16xf32>
    %c0_2 = arith.constant 0 : index
    %c0_3 = arith.constant 0 : index
    %2 = vector.load %arg3[%c0_2, %c0_3] : memref<16x8xf32, #tpu.memory_space<vmem>>, vector<16x8xf32>
    %cst = arith.constant dense<0.000000e+00> : vector<64x8xf32>
    %3 = tpu.matmul %1, %2, %cst {dimension_numbers = #tpu.dot_dimension_numbers<[1], [0], [0], [1], [0, 0, 1, 1], [], []>} : vector<64x16xf32>, vector<16x8xf32>, vector<64x8xf32> -> vector<64x8xf32>
    %c0_4 = arith.constant 0 : index
    %c0_5 = arith.constant 0 : index
    %4 = vector.load %arg4[%c0_4, %c0_5] : memref<64x64xf32, #tpu.memory_space<vmem>>, vector<64x64xf32>
    %cst_6 = arith.constant dense<0.000000e+00> : vector<64x8xf32>
    %5 = tpu.matmul %4, %3, %cst_6 {dimension_numbers = #tpu.dot_dimension_numbers<[1], [0], [0], [1], [0, 0, 1, 1], [], []>} : vector<64x64xf32>, vector<64x8xf32>, vector<64x8xf32> -> vector<64x8xf32>
    %c0_7 = arith.constant 0 : index
    %c0_8 = arith.constant 0 : index
    %c0_9 = arith.constant 0 : index
    %6 = vector.load %arg5[%c0_7, %c0_8, %c0_9] : memref<1x64x8xf32, #tpu.memory_space<vmem>>, vector<1x64x8xf32>
    %7 = vector.shape_cast %6 : vector<1x64x8xf32> to vector<64x8xf32>
    %8 = vector.shape_cast %5 : vector<64x8xf32> to vector<1x64x8xf32>
    tpu.vector_store %arg5[%c0_7, %c0_8, %c0_9], %8 {strides = array<i32>} : memref<1x64x8xf32, #tpu.memory_space<vmem>>, vector<1x64x8xf32>,
    return
  }
  func.func @transform_0(%arg0: i32, %arg1: i32) -> (i32, i32, i32) {
    %c0_i32 = arith.constant 0 : i32
    %c0_i32_0 = arith.constant 0 : i32
    %c0_i32_1 = arith.constant 0 : i32
    return %arg0, %c0_i32, %c0_i32_0 : i32, i32, i32
  }
  func.func @transform_1(%arg0: i32, %arg1: i32) -> (i32, i32) {
    %c0_i32 = arith.constant 0 : i32
    %c0_i32_0 = arith.constant 0 : i32
    return %c0_i32, %arg1 : i32, i32
  }
  func.func @transform_2(%arg0: i32, %arg1: i32) -> (i32, i32) {
    %c0_i32 = arith.constant 0 : i32
    %c0_i32_0 = arith.constant 0 : i32
    %c0_i32_1 = arith.constant 0 : i32
    return %c0_i32, %c0_i32_0 : i32, i32
  }
  func.func @transform_3(%arg0: i32, %arg1: i32) -> (i32, i32, i32) {
    %c0_i32 = arith.constant 0 : i32
    %c0_i32_0 = arith.constant 0 : i32
    return %arg0, %c0_i32, %arg1 : i32, i32, i32
  }
}

</mosaic_0001>

<bundles_post_ra>
// kernel: tpu_custom_call.1
= control target key start
LH: loop header
LB: loop body
LE: loop exit
PB: predicated region body
PF: predicated region fallthrough
CT: control target
= control target key end

     0   :  { %s568_s12 = smov 0   ;;  %s570_s13 = smov 0   ;;  %s662_s0 = inlined_call_operand.vmem [shape: f32[2,64,16], index: 0, kind: input, shape index: {}]   ;;  %s663_s1 = inlined_call_operand.vmem [shape: f32[16,8], index: 1, kind: input, shape index: {}]   ;;  %s664_s2 = inlined_call_operand.vmem [shape: f32[64,64], index: 2, kind: input, shape index: {}]   ;;  %s665_s3 = inlined_call_operand.vmem [shape: f32[2,64,8], index: 3, kind: output, shape index: {}]  }
   0x1   :  { %s572_s14 = smov 0  }
   0x2 LB: > { %s25_s15 = sadd.s32 1, %s542_s13  ;;  %p465_p0 = scmp.ge.s32.totalorder %s546_s14, 1  ;;  %s546_s14 = sphi %s572_s14, %s13_s14   ;;  %s542_s13 = sphi %s570_s13, %s667_s13   ;;  %s538_s12 = sphi %s568_s12, %s666_s12  }
   0x3   : > { %p27_p1 = scmp.ge.s32.totalorder %s25_s15, 2  ;;  %p160_p2 = scmp.lt.s32.totalorder %s546_s14, 3 }
   0x5   : > { %s669_s15 = smov (%p27_p1, %s25_s15), 0  ;;  %p161_p3 = pnand %p465_p0, %p160_p2 }
   0x6   : > { %p191_p4 = scmp.lt.s32.totalorder (!%p161_p3), %s538_s12, 1 }
   0x7   : > { %164 = sbr.rel (%p161_p3) target bundleno = 340 (0x154), region = 32 }
   0xc   : > { %v217_v0 = vld [vmem:[%s663_s1 + $0x8] sm:$0xff]  ;;  %v216_v1 = vld [vmem:[%s663_s1] sm:$0xff]  ;;  %s671_s12 = smov (!%p191_p4, %s538_s12), 1  ;;  %vm218_vm0 = vcmask 130048   ;;  %vm292_vm1 = vcmask 523264   ;;  %v290_v22 = vld [vmem:[%s664_s2 + $0x30] sm:$0xff] }
   0xd   : > { %257 = vmatpush.msra.mxu0 %v217_v0  ;;  %490 = vmatpush.msra.mxu3 %v217_v0  ;;  %s488_s20 = sshll.u32 %s671_s12, 6  ;;  %v288_v18 = vld [vmem:[%s664_s2 + $0x20] sm:$0xff]  ;;  %v289_v20 = vld [vmem:[%s664_s2 + $0x28] sm:$0xff]  ;;  %v286_v23 = vld [vmem:[%s664_s2 + $0x10] sm:$0xff]  ;;  %vm358_vm2 = vcmask 64512  }
   0xe   : > { %s195_s23 = scalar_lea.vmem %s662_s0, %s488_s20  ;;  %v284_v19 = vld [vmem:[%s664_s2] sm:$0xff]  ;;  %v285_v21 = vld [vmem:[%s664_s2 + $0x8] sm:$0xff]  ;;  %v291_v24 = vld [vmem:[%s664_s2 + $0x38] sm:$0xff]  ;;  %s207_s19 = scalar_lea.vmem %s665_s3, %s488_s20 }
   0xf   : > { %258 = vmatpush.msra.mxu0 %v216_v1  ;;  %491 = vmatpush.msra.mxu3 %v216_v1  ;;  %v208_v2 = vld [vmem:[%s195_s23] sm:$0xff]  ;;  %v213_v3 = vld [vmem:[%s195_s23 + $0x28] sm:$0xff]  ;;  %v214_v5 = vld [vmem:[%s195_s23 + $0x30] sm:$0xff] }
  0x10   : > { %470 = vmatmul.msk.f32.vlgmr.msra.gmra.mxu0 %vm218_vm0, %v208_v2  ;;  %475 = vmatmul.msk.f32.vlgmr.msra.gmra.mxu3 %vm218_vm0, %v213_v3  ;;  %v209_v4 = vld [vmem:[%s195_s23 + $0x8] sm:$0xff]  ;;  %v210_v6 = vld [vmem:[%s195_s23 + $0x10] sm:$0xff]  ;;  %v215_v7 = vld [vmem:[%s195_s23 + $0x38] sm:$0xff] }
  0x11   : > { %v211_v8 = vld [vmem:[%s195_s23 + $0x18] sm:$0xff]  ;;  %v212_v9 = vld [vmem:[%s195_s23 + $0x20] sm:$0xff] }
  0x12   : > { %v287_v25 = vld [vmem:[%s664_s2 + $0x18] sm:$0xff] }
  0x18   : > { %471 = vmatmul.msk.f32.gmra.mxu0 %vm218_vm0, %v209_v4  ;;  %476 = vmatmul.msk.f32.gmra.mxu3 %vm218_vm0, %v214_v5 }
  0x20   : > { %472 = vmatmul.msk.f32.gmra.mxu0 %vm218_vm0, %v210_v6  ;;  %477 = vmatmul.msk.f32.gmra.mxu3 %vm218_vm0, %v215_v7 }
  0x28   : > { %473 = vmatmul.msk.f32.gmra.mxu0 %vm218_vm0, %v211_v8 }
  0x30   : > { %474 = vmatmul.msk.f32.gmra.mxu0 %vm218_vm0, %v212_v9 }
  0x8d   : > { %v260_v10 = vpop.f32.mrf.mxu0 }
  0x93   : > { %v275_v11 = vpop.f32.mrf.mxu3 }
  0x95   : > { %v263_v12 = vpop.f32.mrf.mxu0 }
  0x9b   : > { %v278_v13 = vpop.f32.mrf.mxu3 }
  0x9d   : > { %v266_v14 = vpop.f32.mrf.mxu0 }
  0xa3   : > { %v281_v15 = vpop.f32.mrf.mxu3 }
  0xa4   : > { %325 = vmatpush.msra.mxu1 %v281_v15  ;;  %492 = vmatpush.msra.mxu2 %v281_v15 }
  0xa5   : > { %v269_v16 = vpop.f32.mrf.mxu0 }
  0xa6   : > { %326 = vmatpush.msra.mxu1 %v278_v13  ;;  %493 = vmatpush.msra.mxu2 %v278_v13 }
  0xa8   : > { %327 = vmatpush.msra.mxu1 %v275_v11  ;;  %494 = vmatpush.msra.mxu2 %v275_v11 }
  0xad   : > { %v272_v17 = vpop.f32.mrf.mxu0 }
  0xae   : > { %328 = vmatpush.msra.mxu1 %v272_v17  ;;  %495 = vmatpush.msra.mxu2 %v272_v17 }
  0xb0   : > { %329 = vmatpush.msra.mxu1 %v269_v16  ;;  %496 = vmatpush.msra.mxu2 %v269_v16 }
  0xb2   : > { %330 = vmatpush.msra.mxu1 %v266_v14  ;;  %497 = vmatpush.msra.mxu2 %v266_v14 }
  0xb4   : > { %331 = vmatpush.msra.mxu1 %v263_v12  ;;  %498 = vmatpush.msra.mxu2 %v263_v12 }
  0xb6   : > { %332 = vmatpush.msra.mxu1 %v260_v10  ;;  %499 = vmatpush.msra.mxu2 %v260_v10 }
  0xb7   : > { %482 = vmatmul.msk.f32.vlgmr.msra.gmra.mxu2 %vm292_vm1, %v288_v18  ;;  %478 = vmatmul.msk.f32.vlgmr.msra.gmra.mxu1 %vm292_vm1, %v284_v19 }
  0xbf   : > { %483 = vmatmul.msk.f32.gmra.mxu2 %vm292_vm1, %v289_v20  ;;  %479 = vmatmul.msk.f32.gmra.mxu1 %vm292_vm1, %v285_v21 }
  0xc7   : > { %484 = vmatmul.msk.f32.gmra.mxu2 %vm292_vm1, %v290_v22  ;;  %480 = vmatmul.msk.f32.gmra.mxu1 %vm292_vm1, %v286_v23 }
  0xcf   : > { %485 = vmatmul.msk.f32.gmra.mxu2 %vm292_vm1, %v291_v24  ;;  %481 = vmatmul.msk.f32.gmra.mxu1 %vm292_vm1, %v287_v25 }
 0x134   : > { %v334_v26 = vpop.f32.mrf.mxu1 }
 0x135   : > { %359 = vst.msk [vmem:[%s207_s19] sm:$0xff] %vm358_vm2, %v334_v26 }
 0x13a   : > { %v346_v27 = vpop.f32.mrf.mxu2 }
 0x13b   : > { %363 = vst.msk [vmem:[%s207_s19 + $0x20] sm:$0xff] %vm358_vm2, %v346_v27 }
 0x13c   : > { %v337_v28 = vpop.f32.mrf.mxu1 }
 0x13d   : > { %360 = vst.msk [vmem:[%s207_s19 + $0x8] sm:$0xff] %vm358_vm2, %v337_v28 }
 0x142   : > { %v349_v29 = vpop.f32.mrf.mxu2 }
 0x143   : > { %364 = vst.msk [vmem:[%s207_s19 + $0x28] sm:$0xff] %vm358_vm2, %v349_v29 }
 0x144   : > { %v340_v30 = vpop.f32.mrf.mxu1 }
 0x145   : > { %361 = vst.msk [vmem:[%s207_s19 + $0x10] sm:$0xff] %vm358_vm2, %v340_v30 }
 0x14a   : > { %v352_v31 = vpop.f32.mrf.mxu2 }
 0x14b   : > { %365 = vst.msk [vmem:[%s207_s19 + $0x30] sm:$0xff] %vm358_vm2, %v352_v31 }
 0x14c   : > { %v343_v32 = vpop.f32.mrf.mxu1 }
 0x14d   : > { %362 = vst.msk [vmem:[%s207_s19 + $0x18] sm:$0xff] %vm358_vm2, %v343_v32 }
 0x152   : > { %v355_v33 = vpop.f32.mrf.mxu2 }
 0x153   : > { %366 = vst.msk [vmem:[%s207_s19 + $0x38] sm:$0xff] %vm358_vm2, %v355_v33 }
 0x154 PF: > { %s13_s14 = sadd.s32 1, %s546_s14   ;;  %s666_s12 = smov %s542_s13 }
 0x155   : > { %p10_p5 = scmp.ge.s32.totalorder %s13_s14, 4   ;;  %s667_s13 = smov %s669_s15 }
 0x157   :  { %12 = sbr.rel (!%p10_p5) target bundleno = 2 (0x2), region = 65 }

</bundles_post_ra>
